<compile_context>
chip_gen: v7x
topology: tpu7x:2x2x1
jax: 0.10.0
libtpu: 0.0.40
codegen_flags: <defaults>
</compile_context>

<pallas_src>
import jax
import jax.numpy as jnp
from jax.experimental import pallas as pl
from jax.experimental.pallas import tpu as pltpu


def _relu_kernel(x_ref, o_ref):
    # Elementwise hot path: VPU max against a scalar zero on the whole tile.
    o_ref[...] = jnp.maximum(x_ref[...], 0)


# Widest lane-dense last dim we try first; all are multiples of 128.
_WIDTH_CANDIDATES = (4096, 2048, 1024, 512, 256, 128)
# ~8 MiB per block: per-step overhead amortized even at v7x HBM bandwidth.
_TARGET_BLOCK_BYTES = 8 * 1024 * 1024
# Only accept an "evenly dividing" tile if blocks stay at least this big.
_MIN_EVEN_BLOCK_BYTES = 2 * 1024 * 1024
# 8 MiB x (in + out) x 2 buffers = 32 MiB, plus headroom; < v7x's 64 MiB VMEM.
_VMEM_LIMIT_BYTES = 40 * 1024 * 1024


def _sublane_multiple(itemsize: int) -> int:
    """Dtype-native sublane packing: 8 rows for 32-bit, 16 for 16-bit, 32 for 8-bit."""
    if itemsize >= 4:
        return 8
    if itemsize == 2:
        return 16
    return 32


def _relu_slab(slab: jax.Array) -> jax.Array:
    """Run the ReLU kernel over a lane-dense (rows, width) slab."""
    rows, width = slab.shape
    dtype = slab.dtype
    itemsize = max(1, jnp.dtype(dtype).itemsize)
    sub = _sublane_multiple(itemsize)

    tile_rows = max(1, _TARGET_BLOCK_BYTES // (width * itemsize))
    if tile_rows >= rows:
        slab_bytes = rows * width * itemsize
        if slab_bytes > (1 << 20) and rows >= 2 * sub and rows % (2 * sub) == 0:
            # >= 2 even grid steps so both v7x TensorCores can drive DMA.
            tile_rows = rows // 2
        else:
            tile_rows = rows  # single block == full array dims (always legal)
    else:
        # Keep the block sublane-aligned for this dtype's packing.
        tile_rows = max(sub, (tile_rows // sub) * sub)
        # Snap down (in sublane steps) to a value dividing rows evenly, so the
        # last grid step is not a ragged, masked partial block -- but only if
        # that keeps blocks reasonably large.
        if rows % tile_rows != 0:
            t = tile_rows
            while t > sub and rows % t != 0:
                t -= sub
            if rows % t == 0 and t * width * itemsize >= _MIN_EVEN_BLOCK_BYTES:
                tile_rows = t

    grid = (pl.cdiv(rows, tile_rows),)

    return pl.pallas_call(
        _relu_kernel,
        out_shape=jax.ShapeDtypeStruct((rows, width), dtype),
        grid_spec=pltpu.PrefetchScalarGridSpec(
            num_scalar_prefetch=0,
            grid=grid,
            in_specs=[pl.BlockSpec((tile_rows, width), lambda i: (i, 0))],
            out_specs=pl.BlockSpec((tile_rows, width), lambda i: (i, 0)),
        ),
        compiler_params=pltpu.CompilerParams(
            dimension_semantics=("parallel",),
            vmem_limit_bytes=_VMEM_LIMIT_BYTES,
        ),
    )(slab)


def relu_pallas(x: jax.Array) -> jax.Array:
    """ReLU(x) = max(0, x), computed in a Pallas TPU kernel (forward pass)."""
    orig_shape = x.shape
    n = x.size
    if n == 0:
        return x

    # Pick the widest lane width that divides n exactly (no padding needed).
    width = None
    for w in _WIDTH_CANDIDATES:
        if n >= w and n % w == 0:
            width = w
            break

    flat = x.reshape(-1)

    if width is not None:
        out = _relu_slab(flat.reshape(n // width, width))
        return out.reshape(orig_shape)

    # Ragged path: no full-tensor pad/slice.  Kernel over the divisible bulk,
    # plain jnp.maximum over the (< 128-element) tail.
    width = 128
    bulk_n = (n // width) * width
    if bulk_n == 0:
        # Tiny tensor (< 128 elements): not worth a kernel launch.
        return jnp.maximum(x, 0)

    bulk = _relu_slab(flat[:bulk_n].reshape(bulk_n // width, width)).reshape(-1)
    tail = jnp.maximum(flat[bulk_n:], 0)
    return jnp.concatenate([bulk, tail]).reshape(orig_shape)

# TODO(synk): the PyTorch module also caches self.input and defines backward();
# only the forward pass (torch.relu) is implemented here.


if __name__ == "__main__":
    key = jax.random.PRNGKey(0)
    # NCHW input, small shape consistent with a conv-net activation.
    x = jax.random.normal(key, (2, 4, 16, 16), dtype=jnp.float32)

    y = relu_pallas(x)
    y = jax.block_until_ready(y)

    # Correctness check against the pure-JAX reference.
    ref = jnp.maximum(x, 0.0)
    assert y.shape == x.shape and y.dtype == x.dtype
    assert jnp.allclose(y, ref), "Pallas ReLU mismatch vs reference"

    # Larger multi-block path (exercises the even 2-step split for v7x).
    x_big = jax.random.normal(jax.random.PRNGKey(1), (8, 64, 64, 64), jnp.float32)
    y_big = jax.block_until_ready(relu_pallas(x_big))
    assert jnp.allclose(y_big, jnp.maximum(x_big, 0.0)), "Pallas ReLU mismatch (big)"

    # Ragged path (bulk kernel + scalar tail, no pad / no output slice).
    x_rag = jax.random.normal(jax.random.PRNGKey(2), (257,), jnp.float32)
    y_rag = jax.block_until_ready(relu_pallas(x_rag))
    assert jnp.allclose(y_rag, jnp.maximum(x_rag, 0.0)), "Pallas ReLU mismatch (ragged)"

    print("KERNEL_OK")
</pallas_src>

<mosaic_0001>
module attributes {stable_mosaic.version = 11 : i64} {
  func.func @_relu_kernel(%arg0: i32, %arg1: memref<1x2048xf32, #tpu.memory_space<vmem>>, %arg2: memref<1x2048xf32, #tpu.memory_space<vmem>>) attributes {dimension_semantics = [#tpu.dimension_semantics<parallel>], iteration_bounds = array<i64: 1>, scalar_prefetch = 0 : i64, scratch_operands = 0 : i64, tpu.core_type = #tpu.core_type<tc>, window_params = [{transform_indices = @transform_0, window_bounds = array<i64: 1, 2048>}, {transform_indices = @transform_1, window_bounds = array<i64: 1, 2048>}]} {
    %c0 = arith.constant 0 : index
    %c0_0 = arith.constant 0 : index
    %0 = vector.load %arg1[%c0, %c0_0] : memref<1x2048xf32, #tpu.memory_space<vmem>>, vector<1x2048xf32>
    %cst = arith.constant 0.000000e+00 : f32
    %1 = vector.broadcast %cst : f32 to vector<1x2048xf32>
    %2 = arith.maximumf %0, %1 : vector<1x2048xf32>
    %c0_1 = arith.constant 0 : index
    %c0_2 = arith.constant 0 : index
    %3 = vector.load %arg2[%c0_1, %c0_2] : memref<1x2048xf32, #tpu.memory_space<vmem>>, vector<1x2048xf32>
    tpu.vector_store %arg2[%c0_1, %c0_2], %2 {strides = array<i32>} : memref<1x2048xf32, #tpu.memory_space<vmem>>, vector<1x2048xf32>,
    return
  }
  func.func @transform_0(%arg0: i32) -> (i32, i32) {
    %c0_i32 = arith.constant 0 : i32
    %c0_i32_0 = arith.constant 0 : i32
    return %arg0, %c0_i32 : i32, i32
  }
  func.func @transform_1(%arg0: i32) -> (i32, i32) {
    %c0_i32 = arith.constant 0 : i32
    %c0_i32_0 = arith.constant 0 : i32
    return %arg0, %c0_i32 : i32, i32
  }
}

</mosaic_0001>

<bundles_post_ra>
// kernel: tpu_custom_call.1
= control target key start
LH: loop header
LB: loop body
LE: loop exit
PB: predicated region body
PF: predicated region fallthrough
CT: control target
= control target key end

     0   :  { %6 = vsyncpa [#allocation3], 0  ;;  %s128_s0 = inlined_call_operand.hbm [shape: f32[1,2048], index: 0, kind: input, shape index: {}]   ;;  %s129_s1 = inlined_call_operand.hbm [shape: f32[1,2048], index: 1, kind: output, shape index: {}]  }
   0x1   :  { %7 = vsyncpa [#allocation4], 0  ;;  %s92_s6 = smov [#allocation2]   ;;  %s44_s10 = scalar_lea.hbm %s128_s0, 256 }
   0x2   :  { %s14_s7 = sshll.u32 %s92_s6, 4  ;;  %p45_p0 = scmp.ne.s32.totalorder %s128_s0, %s44_s10  ;;  %s15_s7 = int_to_ptr.vmem [resolvable:$true] %s14_s7 }
   0x3   :  { %p48_p1 = scmp.lt.u32.totalorder %s44_s10, %s128_s0 }
   0x5   :  { %p50_p2 = pnand %p48_p1, %p45_p0 }
   0x7   :  { %53 = shalt.err (!%p50_p2)
}
   0x8   :  { %s54_s15 = scalar_lea.vmem %s15_s7, 256  ;;  %p59_p4 = scmp.lt.s32.totalorder %s15_s7, %s15_s7 }
   0x9   :  { %p55_p3 = scmp.ne.s32.totalorder %s15_s7, %s54_s15  ;;  %p60_p5 = scmp.lt.s32.totalorder %s54_s15, %s54_s15 }
   0xb   :  { %p61_p6 = por %p60_p5, %p59_p4 }
   0xd   :  { %p62_p7 = pnand %p61_p6, %p55_p3 }
   0xf   :  { %65 = shalt.err (!%p62_p7)
}
  0x10   :  { %17 = dma.hbm_to_vmem [thread:$0]  %s128_s0, 256, %s15_s7, [#allocation3]  }
  0x11   :  { %88 = dma.done.wait [#allocation3], 256  }
  0x12   :  { %89 = vsyncadd [#allocation3], 4294967040  ;;  %s93_s18 = smov [#allocation5]   ;;  %v21_v0 = vld [vmem:[#allocation2] sm:$0xff]  ;;  %v22_v1 = vld [vmem:[#allocation2 + $0x8] sm:$0xff] }
  0x13   :  { %s33_s19 = sshll.u32 %s93_s18, 4  ;;  %v23_v2 = vmax.f32 %v21_v0, 0.0  ;;  %v24_v3 = vmax.f32 %v22_v1, 0.0  ;;  %s34_s19 = int_to_ptr.vmem [resolvable:$true] %s33_s19 }
  0x14   :  { %s66_s20 = scalar_lea.vmem %s34_s19, 256  ;;  %p71_p9 = scmp.lt.s32.totalorder %s34_s19, %s34_s19 }
  0x15   :  { %25 = vst [vmem:[#allocation5] sm:$0xff] %v23_v2  ;;  %26 = vst [vmem:[#allocation5 + $0x8] sm:$0xff] %v24_v3  ;;  %p67_p8 = scmp.ne.s32.totalorder %s34_s19, %s66_s20  ;;  %p72_p10 = scmp.lt.s32.totalorder %s66_s20, %s66_s20 }
  0x17   :  { %p73_p11 = por %p72_p10, %p71_p9 }
  0x19   :  { %p74_p12 = pnand %p73_p11, %p67_p8 }
  0x1b   :  { %77 = shalt.err (!%p74_p12)
}
  0x1c   :  { %s78_s22 = scalar_lea.hbm %s129_s1, 256 }
  0x1d   :  { %p79_p13 = scmp.ne.s32.totalorder %s129_s1, %s78_s22  ;;  %p82_p0 = scmp.lt.u32.totalorder %s78_s22, %s129_s1 }
  0x1f   :  { %p84_p1 = pnand %p82_p0, %p79_p13 }
  0x21   :  { %87 = shalt.err (!%p84_p1)
}
  0x22   :  { %36 = dma.vmem_to_hbm [thread:$0]  %s34_s19, 256, %s129_s1, [#allocation4]  }
  0x23   :  { %90 = dma.done.wait [#allocation4], 256  }
  0x24   :  { %91 = vsyncadd [#allocation4], 4294967040 }
  0x25   :  { %40 = vsyncpa [#allocation3], 1 }
  0x26   :  { %41 = vsyncpa [#allocation4], 1 }

</bundles_post_ra>
